<compile_context>
chip_gen: v5e
topology: v5e:2x2
jax: 0.10.0
libtpu: 0.0.40
codegen_flags: <defaults>
</compile_context>

<pallas_src>
import functools

import jax
import jax.numpy as jnp
from jax.experimental import pallas as pl
from jax.experimental.pallas import tpu as pltpu


# ----------------------------------------------------------------------------
# Kernel 1: RGB preprocessing — BGR channel flip + (x - 0.5) / 0.5 = 2x - 1,
# permute(0,2,1,3,4) fused into the output BlockSpec.
# ----------------------------------------------------------------------------
def _preproc_rgb_kernel(x_ref, o_ref, *, C):
    # x_ref: (1, 1, C, HW); o_ref: (1, C, HW)
    x = x_ref[0, 0]                                       # (C, HW)
    for c in range(C):                                    # BGR flip
        o_ref[0, c:c + 1, :] = 2.0 * x[C - 1 - c:C - c, :] - 1.0


def preprocess_rgb(videos):
    """videos: [B, T, C, H, W] in [0,1] -> [B, C, T, H, W] normalized, BGR-flipped."""
    B, T, C, H, W = videos.shape
    HW = H * W
    x = videos.reshape(B, T, C, HW).astype(jnp.float32)
    kern = functools.partial(_preproc_rgb_kernel, C=C)
    out = pl.pallas_call(
        kern,
        out_shape=jax.ShapeDtypeStruct((B, C, T * HW), jnp.float32),
        grid=(B, T),
        in_specs=[pl.BlockSpec((1, 1, C, HW), lambda b, t: (b, t, 0, 0))],
        # transpose fused: frame t of batch b lands at [b, :, t*HW:(t+1)*HW]
        out_specs=pl.BlockSpec((1, C, HW), lambda b, t: (b, 0, t)),
        compiler_params=pltpu.CompilerParams(
            dimension_semantics=("parallel", "parallel")),
    )(x)
    return out.reshape(B, C, T, H, W)


# ----------------------------------------------------------------------------
# Kernel 2: Gaussian heatmap generation fused with normalization (2h - 1) and
# the permute(0,2,1,3,4); coordinate grids stay resident across the grid.
# ----------------------------------------------------------------------------
def _gaussian_hmap_kernel(coords_ref, gx_ref, gy_ref, o_ref, *, neg_half_inv_sigma2):
    # coords_ref: (1, 1, N, 2); gx/gy: (1, HW); o_ref: (1, N, HW)
    c = coords_ref[0, 0]                                  # (N, 2)
    cx = c[:, 0:1]                                        # (N, 1)
    cy = c[:, 1:2]                                        # (N, 1)
    xx = gx_ref[...]                                      # (1, HW)
    yy = gy_ref[...]                                      # (1, HW)
    d2 = (xx - cx) ** 2 + (yy - cy) ** 2                  # (N, HW)
    # gaussian heatmap fused with (h - 0.5) / 0.5 normalization
    o_ref[0] = 2.0 * jnp.exp(d2 * neg_half_inv_sigma2) - 1.0


def generate_and_preprocess_heatmaps(keypoints, heatmap_cfg):
    """keypoints: [B, T, N, 2] (x, y) in heatmap pixel coords
       -> normalized heatmaps [B, N, T, H, W] (gen + norm + permute fused)."""
    # TODO(synk): gen_gaussian_hmap_op may also rescale raw coords / threshold by
    # confidence; coords here are assumed to already be in heatmap pixel space.
    B, T, N, _ = keypoints.shape
    H = W = int(heatmap_cfg["input_size"])
    sigma = float(heatmap_cfg.get("sigma", 2.0))
    HW = H * W
    coords = keypoints.astype(jnp.float32)                # (B, T, N, 2)
    yy, xx = jnp.meshgrid(jnp.arange(H, dtype=jnp.float32),
                          jnp.arange(W, dtype=jnp.float32), indexing="ij")
    gx = xx.reshape(1, HW)
    gy = yy.reshape(1, HW)
    kern = functools.partial(
        _gaussian_hmap_kernel, neg_half_inv_sigma2=-0.5 / (sigma * sigma))
    out = pl.pallas_call(
        kern,
        out_shape=jax.ShapeDtypeStruct((B, N, T * HW), jnp.float32),
        grid=(B, T),
        in_specs=[
            pl.BlockSpec((1, 1, N, 2), lambda b, t: (b, t, 0, 0)),
            pl.BlockSpec((1, HW), lambda b, t: (0, 0)),   # resident x-grid
            pl.BlockSpec((1, HW), lambda b, t: (0, 0)),   # resident y-grid
        ],
        out_specs=pl.BlockSpec((1, N, HW), lambda b, t: (b, 0, t)),
        compiler_params=pltpu.CompilerParams(
            dimension_semantics=("parallel", "parallel")),
    )(coords, gx, gy)
    return out.reshape(B, N, T, H, W)


# ----------------------------------------------------------------------------
# Kernel 3: fused visual heads (7 classifiers) + softmax ensemble in one call.
# ----------------------------------------------------------------------------
def _heads_ensemble_kernel(f_ref, w_ref, b_ref, mask_ref,
                           logits_ref, all_ref, last_ref):
    f = f_ref[...]                                        # (Bp, D4) bf16
    w = w_ref[...]                                        # (Hn, D4, Cp) bf16
    Hn = w_ref.shape[0]
    fb = jnp.broadcast_to(f[None], (Hn,) + f.shape)       # (Hn, Bp, D4)
    logits = jnp.einsum("hbd,hdc->hbc", fb, w,
                        preferred_element_type=jnp.float32)   # (Hn, Bp, Cp)
    logits = logits + b_ref[...]                          # (Hn, 1, Cp) bias
    logits_ref[...] = logits
    # per-head softmax over classes
    m = jnp.max(logits, axis=-1, keepdims=True)
    e = jnp.exp(logits - m)
    sm = e * pl.reciprocal(jnp.sum(e, axis=-1, keepdims=True), approx=True)
    all_ref[...] = jnp.log(jnp.sum(sm, axis=0))
    last_ref[...] = jnp.log(jnp.sum(mask_ref[...] * sm, axis=0))


def heads_and_ensemble_forward(feat4_pad, w_stack, b_stack, fuse_mask):
    """feat4_pad: [Bp, 4h] bf16; w_stack: [7, 4h, Cp] bf16; b_stack: [7, 1, Cp] f32;
       fuse_mask: [7, 1, 1] f32 -> (per-head logits [7,Bp,Cp], log all-ens, log fuse-ens)."""
    Hn, _, Cp = w_stack.shape
    Bp = feat4_pad.shape[0]
    # TODO(synk): for production n_cls (~2000) on v7x, tile the class axis with a
    # grid + BlockSpec-pipelined weight tiles instead of holding all heads resident.
    return pl.pallas_call(
        _heads_ensemble_kernel,
        out_shape=(
            jax.ShapeDtypeStruct((Hn, Bp, Cp), jnp.float32),
            jax.ShapeDtypeStruct((Bp, Cp), jnp.float32),
            jax.ShapeDtypeStruct((Bp, Cp), jnp.float32),
        ),
    )(feat4_pad, w_stack, b_stack, fuse_mask)


# ----------------------------------------------------------------------------
# Parameter construction (deterministic, synthetic — no checkpoint loading)
# ----------------------------------------------------------------------------
HEAD_ORDER = ["rgb-h", "rgb-l", "kp-h", "kp-l", "fuse", "fuse-h", "fuse-l"]


def _build_stacked_heads(heads, hidden, n_cls):
    """Stack all 7 heads into one [7, 4h, Cp] weight (bf16) + [7, 1, Cp] bias (f32).

    The fuse heads act on the concatenated feature [rgb-h | rgb-l | kp-h | kp-l];
    single-stream heads use a zero-padded slot.  Padded classes get a -1e9 bias so
    they contribute ~0 to the softmax."""
    D4 = 4 * hidden
    Cp = ((n_cls + 127) // 128) * 128
    slots = {"rgb-h": 0, "rgb-l": 1, "kp-h": 2, "kp-l": 3}
    Ws, Bs = [], []
    for name in HEAD_ORDER:
        w = heads[name]["w"]
        b = heads[name]["b"]
        W4 = jnp.zeros((D4, n_cls), jnp.float32)
        if name in slots:
            off = slots[name] * hidden
            W4 = W4.at[off:off + hidden].set(w)
        elif name == "fuse":                                  # cat(rgb-h, rgb-l, kp-h, kp-l)
            W4 = w
        elif name == "fuse-h":                                # cat(rgb-h, kp-h)
            W4 = W4.at[0:hidden].set(w[:hidden])
            W4 = W4.at[2 * hidden:3 * hidden].set(w[hidden:])
        elif name == "fuse-l":                                # cat(rgb-l, kp-l)
            W4 = W4.at[hidden:2 * hidden].set(w[:hidden])
            W4 = W4.at[3 * hidden:4 * hidden].set(w[hidden:])
        Ws.append(W4)
        Bs.append(b)
    w_stack = jnp.stack(Ws)                                   # (7, 4h, n_cls)
    b_stack = jnp.stack(Bs)                                   # (7, n_cls)
    pad_c = Cp - n_cls
    w_stack = jnp.pad(w_stack, ((0, 0), (0, 0), (0, pad_c)))
    b_stack = jnp.pad(b_stack, ((0, 0), (0, pad_c)), constant_values=-1e9)
    return w_stack.astype(jnp.bfloat16), b_stack[:, None, :].astype(jnp.float32)


def init_params(key, *, rgb_channels, kp_channels, hidden, n_cls):
    keys = jax.random.split(key, 16)
    params = {"hidden": hidden, "n_cls": n_cls}
    # TODO(synk): S3D_four_stream backbone is an external module; replaced with a
    # deterministic global-average-pool + linear projection stub per stream.
    params["bb_rgb_w"] = 0.1 * jax.random.normal(keys[0], (rgb_channels, hidden), jnp.float32)
    params["bb_kp_w"] = 0.1 * jax.random.normal(keys[1], (kp_channels, hidden), jnp.float32)
    # Visual heads (SepConvVisualHead classifiers).
    head_dims = {
        "rgb-h": hidden, "rgb-l": hidden, "kp-h": hidden, "kp-l": hidden,
        "fuse": 4 * hidden, "fuse-h": 2 * hidden, "fuse-l": 2 * hidden,
    }
    heads = {}
    for i, (name, din) in enumerate(head_dims.items()):
        kw, kb = jax.random.split(keys[2 + i])
        heads[name] = {
            "w": 0.05 * jax.random.normal(kw, (din, n_cls), jnp.float32),
            "b": 0.01 * jax.random.normal(kb, (n_cls,), jnp.float32),
        }
    params["heads"] = heads
    params["w_stack"], params["b_stack"] = _build_stacked_heads(heads, hidden, n_cls)
    return params


def backbone_stub(params, rgb_h, rgb_l, hm_h, hm_l):
    """Stand-in for S3D_four_stream: global mean-pool over (T, H, W) + linear proj."""
    def pool(x):  # [B, C, T, H, W] -> [B, C]
        return jnp.mean(x, axis=(2, 3, 4))
    return {
        "rgb-h": pool(rgb_h) @ params["bb_rgb_w"],
        "rgb-l": pool(rgb_l) @ params["bb_rgb_w"],
        "kp-h": pool(hm_h) @ params["bb_kp_w"],
        "kp-l": pool(hm_l) @ params["bb_kp_w"],
    }


# ----------------------------------------------------------------------------
# Full forward (mirrors RecognitionNetwork.forward / forwardImpl, four-stream)
# ----------------------------------------------------------------------------
def recognition_forward(params, sgn_videos, sgn_keypoints, heatmap_cfg):
    videos_hi, videos_lo = sgn_videos
    kps_hi, kps_lo = sgn_keypoints

    # --- torch.no_grad() preprocessing block (heatmap gen + norm + permute fused) ---
    # TODO(synk): torchvision Resize is skipped — inputs are constructed at the
    # target (img_size / heatmap input_size) resolution so Resize is identity.
    rgb_hi = preprocess_rgb(videos_hi)                               # [B, 3, T, H, W]
    rgb_lo = preprocess_rgb(videos_lo)
    hms_hi = generate_and_preprocess_heatmaps(kps_hi, heatmap_cfg)   # [B, N, T, H, W]
    hms_lo = generate_and_preprocess_heatmaps(kps_lo, heatmap_cfg)

    # --- backbone (stub) ---
    s3d = backbone_stub(params, rgb_hi, rgb_lo, hms_hi, hms_lo)

    # --- fused heads + ensemble (single Pallas call; bf16 MXU, f32 accumulation) ---
    hidden, n_cls = params["hidden"], params["n_cls"]
    feat4 = jnp.concatenate(
        [s3d["rgb-h"], s3d["rgb-l"], s3d["kp-h"], s3d["kp-l"]], axis=-1)  # [B, 4h]
    B = feat4.shape[0]
    Bp = max(8, ((B + 7) // 8) * 8)                       # pad batch to sublane granularity
    feat4_p = jnp.pad(feat4, ((0, Bp - B), (0, 0))).astype(jnp.bfloat16)
    fuse_mask = jnp.array([1.0 if "fuse" in h else 0.0 for h in HEAD_ORDER],
                          jnp.float32).reshape(-1, 1, 1)
    logits, ens_all, ens_last = heads_and_ensemble_forward(
        feat4_p, params["w_stack"], params["b_stack"], fuse_mask)

    outputs = {}
    for i, head_name in enumerate(HEAD_ORDER):
        outputs[head_name + "_gloss_logits"] = logits[i, :B, :n_cls]
        # TODO(synk): word_fused_gloss_logits / topk_idx require the contrastive
        # word-embedding branch of SepConvVisualHead (not defined here).
    outputs["ensemble_all_gloss_logits"] = ens_all[:B, :n_cls]
    outputs["ensemble_last_gloss_logits"] = ens_last[:B, :n_cls]
    return outputs


# ----------------------------------------------------------------------------
# Main
# ----------------------------------------------------------------------------
if __name__ == "__main__":
    key = jax.random.PRNGKey(0)
    k_vid, k_vid_lo, k_kp, k_kp_lo, k_par = jax.random.split(key, 5)

    B, T, C, H, W = 2, 8, 3, 16, 16          # small synthetic shapes
    N_KP = 7                                  # keypoints
    HIDDEN = 32                               # visual_head input_size
    N_CLS = 32                                # gloss vocabulary (small for test)
    heatmap_cfg = {"input_size": 16, "sigma": 2.0}

    sgn_videos_hi = jax.random.uniform(k_vid, (B, T, C, H, W), jnp.float32)
    sgn_videos_lo = jax.random.uniform(k_vid_lo, (B, T, C, H, W), jnp.float32)
    sgn_keypoints_hi = jax.random.uniform(k_kp, (B, T, N_KP, 2), jnp.float32,
                                          minval=0.0, maxval=float(H - 1))
    sgn_keypoints_lo = jax.random.uniform(k_kp_lo, (B, T, N_KP, 2), jnp.float32,
                                          minval=0.0, maxval=float(H - 1))

    params = init_params(k_par, rgb_channels=C, kp_channels=N_KP,
                         hidden=HIDDEN, n_cls=N_CLS)

    outputs = recognition_forward(
        params,
        sgn_videos=(sgn_videos_hi, sgn_videos_lo),
        sgn_keypoints=(sgn_keypoints_hi, sgn_keypoints_lo),
        heatmap_cfg=heatmap_cfg,
    )
    outputs = jax.tree_util.tree_map(jax.block_until_ready, outputs)

    # Sanity checks on shapes / finiteness.
    assert outputs["rgb-h_gloss_logits"].shape == (B, N_CLS)
    assert outputs["fuse_gloss_logits"].shape == (B, N_CLS)
    assert outputs["ensemble_all_gloss_logits"].shape == (B, N_CLS)
    assert bool(jnp.all(jnp.isfinite(outputs["ensemble_all_gloss_logits"])))
    assert bool(jnp.all(jnp.isfinite(outputs["ensemble_last_gloss_logits"])))
    print("KERNEL_OK")
</pallas_src>

<mosaic_0001>
module attributes {stable_mosaic.version = 11 : i64} {
  func.func @_preproc_rgb_kernel(%arg0: i32, %arg1: i32, %arg2: memref<1x1x3x256xf32, #tpu.memory_space<vmem>>, %arg3: memref<1x3x256xf32, #tpu.memory_space<vmem>>) attributes {dimension_semantics = [#tpu.dimension_semantics<parallel>, #tpu.dimension_semantics<parallel>], iteration_bounds = array<i64: 2, 8>, scalar_prefetch = 0 : i64, scratch_operands = 0 : i64, tpu.core_type = #tpu.core_type<tc>, window_params = [{transform_indices = @transform_0, window_bounds = array<i64: 1, 1, 3, 256>}, {transform_indices = @transform_1, window_bounds = array<i64: 1, 3, 256>}]} {
    %c0 = arith.constant 0 : index
    %c0_0 = arith.constant 0 : index
    %c0_1 = arith.constant 0 : index
    %c0_2 = arith.constant 0 : index
    %0 = vector.load %arg2[%c0, %c0_0, %c0_1, %c0_2] : memref<1x1x3x256xf32, #tpu.memory_space<vmem>>, vector<1x1x3x256xf32>
    %1 = vector.shape_cast %0 : vector<1x1x3x256xf32> to vector<3x256xf32>
    %2 = vector.extract_strided_slice %1 {offsets = [2, 0], sizes = [1, 256], strides = [1, 1]} : vector<3x256xf32> to vector<1x256xf32>
    %cst = arith.constant 2.000000e+00 : f32
    %3 = vector.broadcast %cst : f32 to vector<1x256xf32>
    %4 = arith.mulf %3, %2 : vector<1x256xf32>
    %cst_3 = arith.constant 1.000000e+00 : f32
    %5 = vector.broadcast %cst_3 : f32 to vector<1x256xf32>
    %6 = arith.subf %4, %5 : vector<1x256xf32>
    %c0_4 = arith.constant 0 : index
    %c0_5 = arith.constant 0 : index
    %c0_6 = arith.constant 0 : index
    %7 = vector.load %arg3[%c0_4, %c0_5, %c0_6] : memref<1x3x256xf32, #tpu.memory_space<vmem>>, vector<1x1x256xf32>
    %8 = vector.shape_cast %7 : vector<1x1x256xf32> to vector<1x256xf32>
    %9 = vector.shape_cast %6 : vector<1x256xf32> to vector<1x1x256xf32>
    tpu.vector_store %arg3[%c0_4, %c0_5, %c0_6], %9 {strides = array<i32>} : memref<1x3x256xf32, #tpu.memory_space<vmem>>, vector<1x1x256xf32>,
    %10 = vector.extract_strided_slice %1 {offsets = [1, 0], sizes = [1, 256], strides = [1, 1]} : vector<3x256xf32> to vector<1x256xf32>
    %cst_7 = arith.constant 2.000000e+00 : f32
    %11 = vector.broadcast %cst_7 : f32 to vector<1x256xf32>
    %12 = arith.mulf %11, %10 : vector<1x256xf32>
    %cst_8 = arith.constant 1.000000e+00 : f32
    %13 = vector.broadcast %cst_8 : f32 to vector<1x256xf32>
    %14 = arith.subf %12, %13 : vector<1x256xf32>
    %c0_9 = arith.constant 0 : index
    %c1 = arith.constant 1 : index
    %c0_10 = arith.constant 0 : index
    %15 = vector.load %arg3[%c0_9, %c1, %c0_10] : memref<1x3x256xf32, #tpu.memory_space<vmem>>, vector<1x1x256xf32>
    %16 = vector.shape_cast %15 : vector<1x1x256xf32> to vector<1x256xf32>
    %17 = vector.shape_cast %14 : vector<1x256xf32> to vector<1x1x256xf32>
    tpu.vector_store %arg3[%c0_9, %c1, %c0_10], %17 {strides = array<i32>} : memref<1x3x256xf32, #tpu.memory_space<vmem>>, vector<1x1x256xf32>,
    %18 = vector.extract_strided_slice %1 {offsets = [0, 0], sizes = [1, 256], strides = [1, 1]} : vector<3x256xf32> to vector<1x256xf32>
    %cst_11 = arith.constant 2.000000e+00 : f32
    %19 = vector.broadcast %cst_11 : f32 to vector<1x256xf32>
    %20 = arith.mulf %19, %18 : vector<1x256xf32>
    %cst_12 = arith.constant 1.000000e+00 : f32
    %21 = vector.broadcast %cst_12 : f32 to vector<1x256xf32>
    %22 = arith.subf %20, %21 : vector<1x256xf32>
    %c0_13 = arith.constant 0 : index
    %c2 = arith.constant 2 : index
    %c0_14 = arith.constant 0 : index
    %23 = vector.load %arg3[%c0_13, %c2, %c0_14] : memref<1x3x256xf32, #tpu.memory_space<vmem>>, vector<1x1x256xf32>
    %24 = vector.shape_cast %23 : vector<1x1x256xf32> to vector<1x256xf32>
    %25 = vector.shape_cast %22 : vector<1x256xf32> to vector<1x1x256xf32>
    tpu.vector_store %arg3[%c0_13, %c2, %c0_14], %25 {strides = array<i32>} : memref<1x3x256xf32, #tpu.memory_space<vmem>>, vector<1x1x256xf32>,
    return
  }
  func.func @transform_0(%arg0: i32, %arg1: i32) -> (i32, i32, i32, i32) {
    %c0_i32 = arith.constant 0 : i32
    %c0_i32_0 = arith.constant 0 : i32
    %c0_i32_1 = arith.constant 0 : i32
    return %arg0, %arg1, %c0_i32, %c0_i32_0 : i32, i32, i32, i32
  }
  func.func @transform_1(%arg0: i32, %arg1: i32) -> (i32, i32, i32) {
    %c0_i32 = arith.constant 0 : i32
    %c0_i32_0 = arith.constant 0 : i32
    return %arg0, %c0_i32, %arg1 : i32, i32, i32
  }
}

</mosaic_0001>

<bundles_post_ra>
// kernel: tpu_custom_call.1
= control target key start
LH: loop header
LB: loop body
LE: loop exit
PB: predicated region body
PF: predicated region fallthrough
CT: control target
= control target key end

     0   :  { %s378_s6 = smov 0   ;;  %s380_s7 = smov 0   ;;  %s429_s0 = inlined_call_operand.vmem [shape: f32[2,8,3,256], index: 0, kind: input, shape index: {}]   ;;  %s430_s1 = inlined_call_operand.vmem [shape: f32[2,3,2048], index: 1, kind: output, shape index: {}]  }
   0x1   :  { %s382_s8 = smov 0   ;;  %s384_s9 = smov 0  }
   0x2   :  { %s386_s10 = smov 0  }
   0x3 LB: > { %s20_s11 = sadd.s32 1, %s358_s8  ;;  %s23_s12 = sadd.s32 1, %s362_s9  ;;  %s366_s10 = sphi %s386_s10, %s11_s10   ;;  %s362_s9 = sphi %s384_s9, %s434_s9   ;;  %s358_s8 = sphi %s382_s8, %s433_s8   ;;  %s354_s7 = sphi %s380_s7, %s432_s7   ;;  %s350_s6 = sphi %s378_s6, %s431_s6  }
   0x4   : > { %p21_p0 = scmp.ge.s32.totalorder %s20_s11, 8  ;;  %p276_p1 = scmp.ge.s32.totalorder %s366_s10, 1 }
   0x5   : > { %p107_p2 = scmp.lt.s32.totalorder %s366_s10, 17 }
   0x6   : > { %s436_s11 = smov (%p21_p0, %s20_s11), 0  ;;  %s438_s12 = smov (!%p21_p0, %s23_s12), %s362_s9 }
   0x7   : > { %p108_p3 = pnand %p276_p1, %p107_p2  ;;  %p25_p4 = scmp.ge.s32.totalorder %s438_s12, 2 }
   0x8   : > { %p135_p5 = scmp.lt.s32.totalorder (!%p108_p3), %s354_s7, 1  ;;  %p137_p6 = scmp.lt.s32.totalorder (!%p108_p3), %s350_s6, 7 }
   0x9   : > { %s440_s12 = smov (%p25_p4, %s438_s12), 0  ;;  %111 = sbr.rel (%p108_p3) target bundleno = 42 (0x2a), region = 24 }
   0xa   : > { %s280_s13 = sshll.u32 (!%p108_p3), %s350_s6, 1 }
   0xb   : > { %p147_p7 = scmp.lt.s32.totalorder (!%p108_p3), %s280_s13, 15 }
   0xe   : > { %s442_s7 = smov (!%p135_p5, %s354_s7), 1  ;;  %s444_s6 = smov (!%p137_p6, %s350_s6), 7  ;;  %v162_v3 = vlaneseq  ;;  %vm174_vm0 = vcmask 1040384  }
   0xf   : > { %s278_s14 = sshll.u32 %s442_s7, 4  ;;  %s277_s15 = sshll.u32 %s444_s6, 1 }
  0x10   : > { %s141_s16 = sadd.s32 %s278_s14, %s277_s15  ;;  %s446_s13 = smov (!%p147_p7, %s280_s13), 15  ;;  %vm164_vm1 = vcmp.lt.s32.totalorder %v162_v3, 256 }
  0x11   : > { %s279_s17 = sshll.u32 %s141_s16, 2  ;;  %s150_s21 = sadd.s32 %s278_s14, %s446_s13 }
  0x12   : > { %s143_s20 = scalar_lea.vmem %s429_s0, %s279_s17  ;;  %s282_s22 = sshll.u32 %s150_s21, 2 }
  0x13   : > { %v154_v0 = vld [vmem:[%s143_s20] sm:$0x77]  ;;  %s152_s25 = scalar_lea.vmem %s430_s1, %s282_s22 }
  0x14   : > { %v155_v1 = vmul.f32 2.0, %v154_v0 }
  0x16   : > { %v283_v2 = vadd.f32 -1.0, %v155_v1 }
  0x18   : > { %158 = vst [vmem:[#allocation1] sm:$0xff] %v283_v2  ;;  %v173_v4 = vrot.slane %v283_v2, 3 }
  0x1a   : > { %v175_v5 = vsel %vm174_vm0, %v283_v2, %v173_v4 }
  0x1b   : > { %285 = vst.msk [vmem:[%s152_s25 + $0x2] ss:$4 sm:$0x3] %vm164_vm1, %v175_v5 }
  0x1f   : > { %v160_v6 = vld [vmem:[#allocation1 + $0x2] ss:$4 sm:$0xff] }
  0x20   : > { %166 = vst.msk [vmem:[%s152_s25] ss:$4 sm:$0x3] %vm164_vm1, %v160_v6 }
  0x21   : > { %167 = vst [vmem:[#allocation1] sm:$0xff] %v283_v2 }
  0x28   : > { %v169_v7 = vld [vmem:[#allocation1 + $0x1] ss:$4 sm:$0xff] }
  0x29   : > { %284 = vst.msk [vmem:[%s152_s25 + $0x1] ss:$4 sm:$0x3] %vm164_vm1, %v169_v7 }
  0x2a PF: > { %s11_s10 = sadd.s32 1, %s366_s10   ;;  %s431_s6 = smov %s358_s8 }
  0x2b   : > { %p8_p8 = scmp.ge.s32.totalorder %s11_s10, 18   ;;  %s432_s7 = smov %s362_s9 }
  0x2c   : > { %s433_s8 = smov %s436_s11  ;;  %s434_s9 = smov %s440_s12 }
  0x2d   :  { %10 = sbr.rel (!%p8_p8) target bundleno = 3 (0x3), region = 58 }

</bundles_post_ra>
